<compile_context>
chip_gen: v7x
topology: tpu7x:2x2x1
jax: 0.10.0
libtpu: 0.0.40
codegen_flags: <defaults>
</compile_context>

<pallas_src>
import functools

import jax
import jax.numpy as jnp
from jax.experimental import pallas as pl
from jax.experimental.pallas import tpu as pltpu

EPS = 1e-8


def _mase_kernel(yp_ref, yt_ref, x_ref, dx_ref, err_ref, *, feature_dim,
                 row_len, use_roll):
    # x tile: (tb, S*F), lane-dense. First difference along seq:
    #   x[b, s+1, f] - x[b, s, f] == x2[b, j+F] - x2[b, j]   (j = s*F + f)
    xb = x_ref[...].astype(jnp.float32)

    if use_roll:
        # rolled[:, j] == xb[:, (j + F) % L]   (jnp.roll semantics, positive
        # shift L-F). Mask out the F wrapped lanes at the end of each row.
        rolled = pltpu.roll(xb, shift=row_len - feature_dim, axis=1)
        lane = jax.lax.broadcasted_iota(jnp.int32, xb.shape, 1)
        valid = lane < (row_len - feature_dim)
        diff = jnp.where(valid, jnp.abs(rolled - xb), jnp.float32(0))
    else:
        # F (and hence L-F) is a multiple of 128: slices stay lane-aligned.
        diff = jnp.abs(xb[:, feature_dim:] - xb[:, :-feature_dim])

    # Per-tile partial sums; cross-tile combine happens in the wrapper.
    dx_ref[...] = jnp.sum(diff).reshape(1, 1, 1)

    err = jnp.abs(yt_ref[...].astype(jnp.float32)
                  - yp_ref[...].astype(jnp.float32))
    err_ref[...] = jnp.sum(err).reshape(1, 1, 1)


def _choose_batch_tile(batch, row_elems, itemsize, target_bytes):
    """Largest batch tile (multiple of 8, or the full batch) whose x block is
    about `target_bytes`."""
    row_bytes = max(1, row_elems * itemsize)
    max_rows = max(8, ((target_bytes // row_bytes) // 8) * 8)
    return batch if batch <= max_rows else max_rows


def mase_loss(y_pred, y_true, x, eps=EPS, tile_target_bytes=6 << 20):
    """MASE loss. y_pred/y_true: (B, F). x: (B, S, F). Returns scalar f32."""
    B, F = y_pred.shape
    Bx, S, Fx = x.shape
    assert y_true.shape == (B, F) and Bx == B and Fx == F

    if S < 2:
        # Empty first-difference: naive_scale == 0, matches the reference.
        err = jnp.abs(y_true.astype(jnp.float32) - y_pred.astype(jnp.float32))
        return jnp.mean(err) / jnp.float32(eps)

    L = S * F                      # lane-dense minor dim for x
    x2 = x.reshape(B, L)           # free row-major reshape
    yp2 = y_pred                   # keep input dtype (no wrapper upcast)
    yt2 = y_true

    x_item = jnp.dtype(x.dtype).itemsize
    y_item = jnp.dtype(y_pred.dtype).itemsize

    tb = _choose_batch_tile(B, L, x_item, tile_target_bytes)
    num_tiles = pl.cdiv(B, tb)
    b_pad = num_tiles * tb
    if b_pad != B:
        # Zero rows contribute 0 to both partial sums; n_err stays B*F.
        pad = ((0, b_pad - B), (0, 0))
        x2, yp2, yt2 = (jnp.pad(a, pad) for a in (x2, yp2, yt2))

    # Explicit scoped-VMEM budget: double-buffered inputs + f32 temporaries
    # (xb / rolled / diff) + headroom. Stays well under 64 MiB (v7x physical).
    x_tile_b = tb * L * x_item
    y_tile_b = tb * F * y_item
    vmem_budget = 2 * x_tile_b + 4 * y_tile_b + 3 * tb * L * 4 + (2 << 20)
    vmem_limit = int(min(max(vmem_budget, 16 << 20), 64 << 20))

    kernel = functools.partial(_mase_kernel, feature_dim=F, row_len=L,
                               use_roll=(F % 128 != 0))

    dx_parts, err_parts = pl.pallas_call(
        kernel,
        out_shape=(jax.ShapeDtypeStruct((num_tiles, 1, 1), jnp.float32),
                   jax.ShapeDtypeStruct((num_tiles, 1, 1), jnp.float32)),
        grid_spec=pltpu.PrefetchScalarGridSpec(
            num_scalar_prefetch=0,
            grid=(num_tiles,),
            in_specs=[
                pl.BlockSpec((tb, F), lambda b: (b, 0)),   # y_pred tile
                pl.BlockSpec((tb, F), lambda b: (b, 0)),   # y_true tile
                pl.BlockSpec((tb, L), lambda b: (b, 0)),   # x tile (B, S*F)
            ],
            out_specs=[
                pl.BlockSpec((1, 1, 1), lambda b: (b, 0, 0)),  # |dx| partial
                pl.BlockSpec((1, 1, 1), lambda b: (b, 0, 0)),  # |err| partial
            ],
        ),
        compiler_params=pltpu.CompilerParams(
            dimension_semantics=("parallel",),   # no carried state -> v7x 2 TC
            vmem_limit_bytes=vmem_limit),
    )(yp2, yt2, x2)

    naive_scale = jnp.sum(dx_parts)
    err_mean = jnp.sum(err_parts) / jnp.float32(B * F)   # original B*F
    return err_mean / (naive_scale + jnp.float32(eps))


def _reference(y_pred, y_true, x, eps=EPS):
    error = jnp.abs(y_true - y_pred)
    consecutive_diff = jnp.abs(x[:, 1:, :] - x[:, :-1, :])
    naive_scale = jnp.sum(consecutive_diff)
    return jnp.mean(error / (naive_scale + eps))


if __name__ == "__main__":
    key = jax.random.PRNGKey(0)
    k1, k2, k3, k4, k5, k6 = jax.random.split(key, 6)

    # Case 1: the module's nominal small shapes.
    B, S, F = 2, 8, 32  # batch, seq_length, feature_dim
    y_pred = jax.random.normal(k1, (B, F), dtype=jnp.float32)
    y_true = jax.random.normal(k2, (B, F), dtype=jnp.float32)
    x = jax.random.normal(k3, (B, S, F), dtype=jnp.float32)

    loss = jax.block_until_ready(mase_loss(y_pred, y_true, x))
    ref = _reference(y_pred, y_true, x)
    assert jnp.allclose(loss, ref, rtol=1e-5, atol=1e-6), (loss, ref)

    # Case 2: exercise the multi-tile parallel grid + zero-padding path by
    # forcing a tiny tile budget (B=10 -> tb=8, 2 tiles, padded to 16 rows).
    B2, S2, F2 = 10, 4, 32
    y_pred2 = jax.random.normal(k4, (B2, F2), dtype=jnp.float32)
    y_true2 = jax.random.normal(k5, (B2, F2), dtype=jnp.float32)
    x2 = jax.random.normal(k6, (B2, S2, F2), dtype=jnp.float32)

    loss2 = jax.block_until_ready(
        mase_loss(y_pred2, y_true2, x2, tile_target_bytes=4096))
    ref2 = _reference(y_pred2, y_true2, x2)
    assert jnp.allclose(loss2, ref2, rtol=1e-5, atol=1e-6), (loss2, ref2)

    print("KERNEL_OK")
</pallas_src>

<mosaic_0001>
module attributes {stable_mosaic.version = 11 : i64} {
  func.func @_mase_kernel(%arg0: i32, %arg1: memref<2x32xf32, #tpu.memory_space<vmem>>, %arg2: memref<2x32xf32, #tpu.memory_space<vmem>>, %arg3: memref<2x256xf32, #tpu.memory_space<vmem>>, %arg4: memref<1x1x1xf32, #tpu.memory_space<vmem>>, %arg5: memref<1x1x1xf32, #tpu.memory_space<vmem>>) attributes {dimension_semantics = [#tpu.dimension_semantics<parallel>], iteration_bounds = array<i64: 1>, scalar_prefetch = 0 : i64, scratch_operands = 0 : i64, tpu.core_type = #tpu.core_type<tc>, window_params = [{transform_indices = @transform_0, window_bounds = array<i64: 2, 32>}, {transform_indices = @transform_1, window_bounds = array<i64: 2, 32>}, {transform_indices = @transform_2, window_bounds = array<i64: 2, 256>}, {transform_indices = @transform_3, window_bounds = array<i64: 1, 1, 1>}, {transform_indices = @transform_4, window_bounds = array<i64: 1, 1, 1>}]} {
    %c0 = arith.constant 0 : index
    %c0_0 = arith.constant 0 : index
    %0 = vector.load %arg3[%c0, %c0_0] : memref<2x256xf32, #tpu.memory_space<vmem>>, vector<2x256xf32>
    %c224_i32 = arith.constant 224 : i32
    %1 = tpu.dynamic_rotate %0 by %c224_i32 dim 1 : vector<2x256xf32>, i32 -> vector<2x256xf32>
    %2 = tpu.iota {dimensions = array<i32: 1>} : vector<2x256xi32>
    %c224_i32_1 = arith.constant 224 : i32
    %3 = vector.broadcast %c224_i32_1 : i32 to vector<2x256xi32>
    %4 = arith.cmpi slt, %2, %3 : vector<2x256xi32>
    %5 = arith.subf %1, %0 : vector<2x256xf32>
    %6 = math.absf %5 : vector<2x256xf32>
    %cst = arith.constant 0.000000e+00 : f32
    %7 = vector.broadcast %cst : f32 to vector<2x256xf32>
    %8 = arith.select %4, %6, %7 : vector<2x256xi1>, vector<2x256xf32>
    %9 = vector.shape_cast %8 : vector<2x256xf32> to vector<1x2x256xf32>
    %cst_2 = arith.constant dense<0.000000e+00> : vector<1xf32>
    %10 = vector.multi_reduction <add>, %9, %cst_2 [1, 2] : vector<1x2x256xf32> to vector<1xf32>
    %11 = vector.shape_cast %10 : vector<1xf32> to vector<1x1x1xf32>
    %12 = vector.extract %11[0, 0, 0] : f32 from vector<1x1x1xf32>
    %13 = vector.broadcast %12 : f32 to vector<1x1x1xf32>
    %c0_3 = arith.constant 0 : index
    %c0_4 = arith.constant 0 : index
    %c0_5 = arith.constant 0 : index
    %14 = vector.load %arg4[%c0_3, %c0_4, %c0_5] : memref<1x1x1xf32, #tpu.memory_space<vmem>>, vector<1x1x1xf32>
    tpu.vector_store %arg4[%c0_3, %c0_4, %c0_5], %13 {strides = array<i32>} : memref<1x1x1xf32, #tpu.memory_space<vmem>>, vector<1x1x1xf32>,
    %c0_6 = arith.constant 0 : index
    %c0_7 = arith.constant 0 : index
    %15 = vector.load %arg2[%c0_6, %c0_7] : memref<2x32xf32, #tpu.memory_space<vmem>>, vector<2x32xf32>
    %c0_8 = arith.constant 0 : index
    %c0_9 = arith.constant 0 : index
    %16 = vector.load %arg1[%c0_8, %c0_9] : memref<2x32xf32, #tpu.memory_space<vmem>>, vector<2x32xf32>
    %17 = arith.subf %15, %16 : vector<2x32xf32>
    %18 = math.absf %17 : vector<2x32xf32>
    %19 = vector.shape_cast %18 : vector<2x32xf32> to vector<1x2x32xf32>
    %cst_10 = arith.constant dense<0.000000e+00> : vector<1xf32>
    %20 = vector.multi_reduction <add>, %19, %cst_10 [1, 2] : vector<1x2x32xf32> to vector<1xf32>
    %21 = vector.shape_cast %20 : vector<1xf32> to vector<1x1x1xf32>
    %22 = vector.extract %21[0, 0, 0] : f32 from vector<1x1x1xf32>
    %23 = vector.broadcast %22 : f32 to vector<1x1x1xf32>
    %c0_11 = arith.constant 0 : index
    %c0_12 = arith.constant 0 : index
    %c0_13 = arith.constant 0 : index
    %24 = vector.load %arg5[%c0_11, %c0_12, %c0_13] : memref<1x1x1xf32, #tpu.memory_space<vmem>>, vector<1x1x1xf32>
    tpu.vector_store %arg5[%c0_11, %c0_12, %c0_13], %23 {strides = array<i32>} : memref<1x1x1xf32, #tpu.memory_space<vmem>>, vector<1x1x1xf32>,
    return
  }
  func.func @transform_0(%arg0: i32) -> (i32, i32) {
    %c0_i32 = arith.constant 0 : i32
    %c0_i32_0 = arith.constant 0 : i32
    return %arg0, %c0_i32 : i32, i32
  }
  func.func @transform_1(%arg0: i32) -> (i32, i32) {
    %c0_i32 = arith.constant 0 : i32
    %c0_i32_0 = arith.constant 0 : i32
    return %arg0, %c0_i32 : i32, i32
  }
  func.func @transform_2(%arg0: i32) -> (i32, i32) {
    %c0_i32 = arith.constant 0 : i32
    %c0_i32_0 = arith.constant 0 : i32
    return %arg0, %c0_i32 : i32, i32
  }
  func.func @transform_3(%arg0: i32) -> (i32, i32, i32) {
    %c0_i32 = arith.constant 0 : i32
    %c0_i32_0 = arith.constant 0 : i32
    %c0_i32_1 = arith.constant 0 : i32
    return %arg0, %c0_i32, %c0_i32_0 : i32, i32, i32
  }
  func.func @transform_4(%arg0: i32) -> (i32, i32, i32) {
    %c0_i32 = arith.constant 0 : i32
    %c0_i32_0 = arith.constant 0 : i32
    %c0_i32_1 = arith.constant 0 : i32
    return %arg0, %c0_i32, %c0_i32_0 : i32, i32, i32
  }
}

</mosaic_0001>

<bundles_post_ra>
// kernel: tpu_custom_call.1
= control target key start
LH: loop header
LB: loop body
LE: loop exit
PB: predicated region body
PF: predicated region fallthrough
CT: control target
= control target key end

     0   :  { %10 = vsyncpa [#allocation3], 0  ;;  %s276_s0 = inlined_call_operand.hbm [shape: f32[2,32], index: 0, kind: input, shape index: {}]   ;;  %s277_s1 = inlined_call_operand.vmem [shape: f32[2,32], index: 1, kind: input, shape index: {}]   ;;  %s278_s2 = inlined_call_operand.vmem [shape: f32[2,256], index: 2, kind: input, shape index: {}]   ;;  %s279_s3 = inlined_call_operand.hbm [shape: f32[1,1,1], index: 3, kind: output, shape index: {0}]   ;;  %s280_s4 = inlined_call_operand.hbm [shape: f32[1,1,1], index: 4, kind: output, shape index: {1}]  }
   0x1   :  { %11 = vsyncpa [#allocation4], 0 }
   0x2   :  { %12 = vsyncpa [#allocation7], 0  ;;  %s203_s15 = smov [#allocation2]   ;;  %s131_s19 = scalar_lea.hbm %s276_s0, 32 }
   0x3   :  { %s19_s16 = sshll.u32 %s203_s15, 4  ;;  %p132_p0 = scmp.ne.s32.totalorder %s276_s0, %s131_s19  ;;  %s20_s16 = int_to_ptr.vmem [resolvable:$true] %s19_s16 }
   0x4   :  { %p135_p1 = scmp.lt.u32.totalorder %s131_s19, %s276_s0 }
   0x6   :  { %p137_p2 = pnand %p135_p1, %p132_p0 }
   0x8   :  { %140 = shalt.err (!%p137_p2)
}
   0x9   :  { %s141_s24 = scalar_lea.vmem %s20_s16, 32  ;;  %p146_p4 = scmp.lt.s32.totalorder %s20_s16, %s20_s16 }
   0xa   :  { %p142_p3 = scmp.ne.s32.totalorder %s20_s16, %s141_s24  ;;  %p147_p5 = scmp.lt.s32.totalorder %s141_s24, %s141_s24 }
   0xc   :  { %p148_p6 = por %p147_p5, %p146_p4 }
   0xe   :  { %p149_p7 = pnand %p148_p6, %p142_p3 }
  0x10   :  { %152 = shalt.err (!%p149_p7)
}
  0x11   :  { %22 = dma.hbm_to_vmem [thread:$0]  %s276_s0, 32, %s20_s16, [#allocation3]  }
  0x12   :  { %197 = dma.done.wait [#allocation3], 32  }
  0x13   :  { %198 = vsyncadd [#allocation3], 4294967264  ;;  %v122_v0 = vld.sshfl [vmem:[%s278_s2] sm:$0x33 pattern:$0x76325410]  ;;  %v46_v2 = vlaneseq }
  0x14   :  { %s204_s29 = smov 96   ;;  %v39_v1 = vcombine.high %v122_v0, %v122_v0  ;;  %v76_v7 = vld [vmem:[%s277_s1] sm:$0x3]  ;;  %v77_v8 = vld [vmem:[#allocation2] sm:$0x3]  ;;  %vm60_vm2 = vcmask 1041408  }
  0x15   :  { %42 = vrot.lane.b32.xlu0 %v122_v0, %s204_s29  ;;  %v47_v3 = vand.u32 127, %v46_v2  ;;  %v78_v13 = vsub.f32 %v76_v7, %v77_v8  ;;  %vm80_vm3 = vcmask 254976   ;;  %s205_s0 = smov [#allocation5]   ;;  %vm74_vm4 = vcmask 0   ;;  %s206_s6 = smov [#allocation6]  }
  0x16   :  { %s99_s1 = sshll.u32 %s205_s0, 4  ;;  %s109_s7 = sshll.u32 %s206_s6, 4  ;;  %s100_s1 = int_to_ptr.vmem [resolvable:$true] %s99_s1  ;;  %s110_s7 = int_to_ptr.vmem [resolvable:$true] %s109_s7 }
  0x17   :  { %vm48_vm0 = vcmp.lt.s32.totalorder %v47_v3, 96  ;;  %v51_v5 = vadd.s32 128, %v47_v3  ;;  %v79_v19 = vand.u32 2147483647, %v78_v13  ;;  %s153_s8 = scalar_lea.vmem %s100_s1, 16  ;;  %s157_s9 = scalar_lea.vmem %s100_s1, 32 }
  0x18   :  { %p154_p8 = scmp.ne.s32.totalorder %s100_s1, %s153_s8  ;;  %p158_p9 = scmp.lt.s32.totalorder %s100_s1, %s100_s1 }
  0x19   :  { %44 = vrot.lane.b32.xlu0 %v39_v1, %s204_s29  ;;  %vm53_vm1 = vcmp.lt.s32.totalorder %v51_v5, 224  ;;  %v81_v21 = vsel %vm80_vm3, %v79_v19, 0.0  ;;  %p159_p10 = scmp.lt.s32.totalorder %s157_s9, %s153_s8 }
  0x1b   :  { %p160_p11 = por %p159_p10, %p158_p9 }
  0x1d   :  { %p161_p12 = pnand %p160_p11, %p154_p8 }
  0x87   :  { %v43_v4 = vpop.permute.xlu0 %42 }
  0x8b   :  { %v45_v6 = vpop.permute.xlu0 %44 }
  0x8c   :  { %v49_v9 = vsel %vm48_vm0, %v43_v4, %v45_v6  ;;  %v50_v10 = vsel %vm48_vm0, %v45_v6, %v43_v4 }
  0x8d   :  { %v54_v11 = vsub.f32 %v49_v9, %v122_v0  ;;  %v55_v12 = vsub.f32 %v50_v10, %v39_v1 }
  0x8f   :  { %v57_v14 = vand.u32 2147483647, %v55_v12  ;;  %v56_v15 = vand.u32 2147483647, %v54_v11 }
  0x91   :  { %v59_v16 = vsel %vm53_vm1, %v57_v14, 0.0  ;;  %v61_v17 = vsel %vm60_vm2, %v56_v15, 0.0 }
  0x92   :  { %v62_v18 = vsel %vm60_vm2, %v59_v16, 0.0 }
  0x93   :  { %v63_v20 = vadd.f32 %v62_v18, %v61_v17 }
  0x95   :  { %64 = vadd.xlane.f32.xlu1 %v63_v20 }
  0x99   :  { %82 = vadd.xlane.f32.xlu1 %v81_v21 }
 0x122   :  { %v65_v22 = vpop.xlane.xlu1 %64 }
 0x123   :  { %v66_v23 = vrot.slane %v65_v22, 4 }
 0x125   :  { %v67_v24 = vadd.f32 %v66_v23, %v65_v22 }
 0x126   :  { %v83_v25 = vpop.xlane.xlu1 %82 }
 0x127   :  { %v68_v26 = vrot.slane %v67_v24, 2  ;;  %v84_v27 = vrot.slane %v83_v25, 4 }
 0x129   :  { %v85_v28 = vadd.f32 %v84_v27, %v83_v25  ;;  %v69_v29 = vadd.f32 %v68_v26, %v67_v24 }
 0x12b   :  { %v86_v30 = vrot.slane %v85_v28, 2  ;;  %v70_v31 = vrot.slane %v69_v29, 1 }
 0x12d   :  { %v87_v32 = vadd.f32 %v86_v30, %v85_v28  ;;  %v71_v33 = vadd.f32 %v70_v31, %v69_v29 }
 0x12f   :  { %123 = vpush %v71_v33  ;;  %v88_v34 = vrot.slane %v87_v32, 1 }
 0x131   :  { %v89_v35 = vadd.f32 %v88_v34, %v87_v32 }
 0x133   :  { %125 = vpush %v89_v35 }
 0x160   :  { %s124_s2 = spop %123 }
 0x161   :  { %v73_v36 = vstv %s124_s2 }
 0x162   :  { %75 = vst.msk [vmem:[#allocation5] sm:$0x1] %vm74_vm4, %v73_v36 }
 0x163   :  { %164 = shalt.err (!%p161_p12)
}
 0x164   :  { %s165_s12 = scalar_lea.hbm %s279_s3, 16 }
 0x165   :  { %p166_p13 = scmp.ne.s32.totalorder %s279_s3, %s165_s12  ;;  %p169_p0 = scmp.lt.u32.totalorder %s165_s12, %s279_s3 }
 0x167   :  { %p171_p1 = pnand %p169_p0, %p166_p13 }
 0x169   :  { %174 = shalt.err (!%p171_p1)
}
 0x16a   :  { %102 = dma.vmem_to_hbm [thread:$0]  %s100_s1, 16, %s279_s3, [#allocation4]  }
 0x16b   :  { %s126_s19 = spop %125  ;;  %s175_s20 = scalar_lea.vmem %s110_s7, 16 }
 0x16c   :  { %v91_v37 = vstv %s126_s19  ;;  %p176_p2 = scmp.ne.s32.totalorder %s110_s7, %s175_s20  ;;  %s179_s21 = scalar_lea.vmem %s110_s7, 32 }
 0x16d   :  { %92 = vst.msk [vmem:[#allocation6] sm:$0x1] %vm74_vm4, %v91_v37  ;;  %p180_p3 = scmp.lt.s32.totalorder %s110_s7, %s110_s7  ;;  %p181_p4 = scmp.lt.s32.totalorder %s179_s21, %s175_s20 }
 0x16f   :  { %p182_p5 = por %p181_p4, %p180_p3 }
 0x171   :  { %p183_p6 = pnand %p182_p5, %p176_p2 }
 0x173   :  { %186 = shalt.err (!%p183_p6)
}
 0x174   :  { %s187_s24 = scalar_lea.hbm %s280_s4, 16 }
 0x175   :  { %p188_p7 = scmp.ne.s32.totalorder %s280_s4, %s187_s24  ;;  %p191_p8 = scmp.lt.u32.totalorder %s187_s24, %s280_s4 }
 0x177   :  { %p193_p9 = pnand %p191_p8, %p188_p7 }
 0x179   :  { %196 = shalt.err (!%p193_p9)
}
 0x17a   :  { %112 = dma.vmem_to_hbm [thread:$0]  %s110_s7, 16, %s280_s4, [#allocation7]  }
 0x17b   :  { %199 = dma.done.wait [#allocation4], 16  }
 0x17c   :  { %200 = vsyncadd [#allocation4], 4294967280 }
 0x17d   :  { %201 = dma.done.wait [#allocation7], 16  }
 0x17e   :  { %202 = vsyncadd [#allocation7], 4294967280 }
 0x17f   :  { %119 = vsyncpa [#allocation3], 1 }
 0x180   :  { %120 = vsyncpa [#allocation4], 1 }
 0x181   :  { %121 = vsyncpa [#allocation7], 1 }

</bundles_post_ra>
